<compile_context>
chip_gen: v7x
topology: tpu7x:2x2x1
jax: 0.10.0
libtpu: 0.0.40
codegen_flags: <defaults>
</compile_context>

<pallas_src>
import math

import jax
import jax.numpy as jnp
from jax.experimental import pallas as pl
from jax.experimental.pallas import tpu as pltpu

IN_FEATURES = 32
HIDDEN = max(IN_FEATURES // 2, 8)      # = 16, Regressor's default hidden_features
PACK = 8                               # logical rows packed per VMEM row
PACKED_IN = PACK * IN_FEATURES         # 256 lanes (lane-dense x tile)
PACKED_HID = PACK * HIDDEN             # 128 lanes (lane-dense hidden tile)
MAX_TM = 4096                          # packed rows per grid step (= 32768 logical rows)


# --------------------------------- kernel -----------------------------------
def regressor_kernel(x_ref, w1b1_ref, w2b2_ref, out_ref):
    x = x_ref[...]                                                   # [TM, 256] bf16

    # Layer 1 (+ ReLU). W1 is block-diagonal so one MXU matmul computes the hidden
    # activations of 8 packed rows per VMEM row -> h is a fully lane-dense [TM, 128].
    w1 = w1b1_ref[0:PACKED_IN, :]                                    # [256, 128] bf16
    b1 = w1b1_ref[PACKED_IN:PACKED_IN + 1, :].astype(jnp.float32)    # [1, 128]
    h = jnp.dot(x, w1, preferred_element_type=jnp.float32) + b1      # f32 accumulation
    h = jnp.maximum(h, 0.0)                                          # ReLU; Dropout = identity (eval)

    # Layer 2 on the MXU with a block-diagonal W2: output block is [TM, 8]
    # (8 logical outputs per row) instead of a 1-lane-wide [8*TM, 1] column.
    w2 = w2b2_ref[0:PACKED_HID, :].astype(jnp.bfloat16)              # [128, 8]
    b2 = w2b2_ref[PACKED_HID:PACKED_HID + 1, :]                      # [1, 8] f32
    out_ref[...] = (
        jnp.dot(h.astype(jnp.bfloat16), w2, preferred_element_type=jnp.float32) + b2
    )


# ----------------------------- tile selection --------------------------------
def _tile_rows(m):
    """Packed-row tile: big enough to amortize per-step pipeline overhead, but with
    >=2 grid steps whenever the batch allows (v7x has 2 TensorCores); sublane-aligned."""
    if m <= PACK:
        return m                                   # single full-array block
    half = -(-m // 2)                              # cdiv(m, 2)
    return min(MAX_TM, min(m, ((half + 7) // 8) * 8))


# -------------------------------- wrapper ------------------------------------
@jax.jit
def _regressor_fwd(w1b1, w2b2, x_blk):
    m = x_blk.shape[0]
    tm = _tile_rows(m)
    grid = (pl.cdiv(m, tm),)
    return pl.pallas_call(
        regressor_kernel,
        out_shape=jax.ShapeDtypeStruct((m, PACK), jnp.float32),
        grid=grid,
        in_specs=[
            pl.BlockSpec((tm, PACKED_IN), lambda i: (i, 0)),               # packed x tile
            pl.BlockSpec((PACKED_IN + 1, PACKED_HID), lambda i: (0, 0)),   # W1|b1 slab (constant)
            pl.BlockSpec((PACKED_HID + 1, PACK), lambda i: (0, 0)),        # W2|b2 slab (constant)
        ],
        out_specs=pl.BlockSpec((tm, PACK), lambda i: (i, 0)),
        compiler_params=pltpu.CompilerParams(
            dimension_semantics=("parallel",),
            vmem_limit_bytes=32 * 1024 * 1024,
        ),
    )(x_blk, w1b1, w2b2)


def regressor_forward(packed_params, x):
    """x: [B, in_features] -> [B, 1], matching eval-mode Regressor.forward."""
    w1b1, w2b2 = packed_params
    x = jnp.asarray(x)
    batch = x.shape[0]
    b_pad = -(-batch // PACK) * PACK
    if b_pad != batch:
        # Only for batches not divisible by 8 (<= 7 extra rows); aligned batches skip it.
        x = jnp.pad(x, ((0, b_pad - batch), (0, 0)))
    # Free row-major reshape: 8 logical rows per VMEM row -> lane-dense tiles; bf16 in HBM.
    x_blk = x.astype(jnp.bfloat16).reshape(b_pad // PACK, PACKED_IN)
    out = _regressor_fwd(w1b1, w2b2, x_blk)
    return out.reshape(b_pad, 1)[:batch]


# ----------------------------- parameter packing ------------------------------
def pack_params(params):
    """One-time packing (hoisted out of the per-call path) into two slabs:
       [257,128] bf16 = block-diag(W1) | tiled b1,   [129,8] f32 = block-diag(W2) | b2."""
    w1 = jnp.asarray(params["w1"], jnp.float32)                  # [32, 16]
    b1 = jnp.asarray(params["b1"], jnp.float32).reshape(1, HIDDEN)
    w2 = jnp.asarray(params["w2"], jnp.float32).reshape(HIDDEN)  # [16]
    b2 = jnp.asarray(params["b2"], jnp.float32).reshape(1, 1)

    eye = jnp.eye(PACK, dtype=jnp.float32)
    w1_blk = jnp.einsum("pq,ij->piqj", eye, w1).reshape(PACKED_IN, PACKED_HID)
    b1_blk = jnp.tile(b1, (1, PACK))                                           # [1, 128]
    w1b1 = jnp.concatenate([w1_blk, b1_blk], axis=0).astype(jnp.bfloat16)      # [257, 128]

    w2_blk = jnp.einsum("pq,i->piq", eye, w2).reshape(PACKED_HID, PACK)        # [128, 8]
    b2_row = jnp.tile(b2, (1, PACK))                                           # [1, 8]
    w2b2 = jnp.concatenate([w2_blk, b2_row], axis=0)                           # [129, 8] f32
    return w1b1, w2b2


# ----------------------------- parameter init --------------------------------
def init_params(key):
    """Matches nn.Linear default init + the Regressor's last-bias override."""
    k1, k2, k3, k4 = jax.random.split(key, 4)
    bound1 = 1.0 / math.sqrt(IN_FEATURES)
    w1 = jax.random.uniform(k1, (IN_FEATURES, HIDDEN), jnp.float32, -bound1, bound1)
    b1 = jax.random.uniform(k2, (1, HIDDEN), jnp.float32, -bound1, bound1)
    bound2 = 1.0 / math.sqrt(HIDDEN)
    w2 = jax.random.uniform(k3, (HIDDEN, 1), jnp.float32, -bound2, bound2)
    inv = lambda hr: math.log((hr - 30.0) / (180.0 - hr))
    b2 = jax.random.uniform(k4, (1,), jnp.float32, inv(75.0), inv(100.0))
    return {"w1": w1, "b1": b1, "w2": w2, "b2": b2}


# ---------------------------------- main --------------------------------------
if __name__ == "__main__":
    key = jax.random.PRNGKey(0)
    pkey, xkey1, xkey2 = jax.random.split(key, 3)
    params = init_params(pkey)
    packed = pack_params(params)

    def ref_forward(x):
        h = jnp.maximum(x @ params["w1"] + params["b1"], 0.0)
        return h @ params["w2"] + params["b2"]

    # Small example matching the module's forward signature: x = [B=2, in_features=32].
    x_small = jax.random.normal(xkey1, (2, IN_FEATURES), jnp.float32)
    out_small = regressor_forward(packed, x_small)
    jax.block_until_ready(out_small)
    assert out_small.shape == (2, 1)
    assert bool(jnp.allclose(out_small, ref_forward(x_small), atol=2e-2, rtol=2e-2))

    # Exercise the tiled path: multi-step grid + ragged (non-multiple-of-8) batch.
    x_big = jax.random.normal(xkey2, (333, IN_FEATURES), jnp.float32)
    out_big = regressor_forward(packed, x_big)
    jax.block_until_ready(out_big)
    assert out_big.shape == (333, 1)
    assert bool(jnp.allclose(out_big, ref_forward(x_big), atol=2e-2, rtol=2e-2))

    print("KERNEL_OK")
</pallas_src>

<mosaic_0001>
module attributes {stable_mosaic.version = 11 : i64} {
  func.func @regressor_kernel(%arg0: i32, %arg1: memref<1x256xbf16, #tpu.memory_space<vmem>>, %arg2: memref<257x128xbf16, #tpu.memory_space<vmem>>, %arg3: memref<129x8xf32, #tpu.memory_space<vmem>>, %arg4: memref<1x8xf32, #tpu.memory_space<vmem>>) attributes {dimension_semantics = [#tpu.dimension_semantics<parallel>], iteration_bounds = array<i64: 1>, scalar_prefetch = 0 : i64, scratch_operands = 0 : i64, tpu.core_type = #tpu.core_type<tc>, window_params = [{transform_indices = @transform_0, window_bounds = array<i64: 1, 256>}, {pipeline_mode = #tpu.pipeline_mode<synchronous>, transform_indices = @transform_1, window_bounds = array<i64: 257, 128>}, {pipeline_mode = #tpu.pipeline_mode<synchronous>, transform_indices = @transform_2, window_bounds = array<i64: 129, 8>}, {transform_indices = @transform_3, window_bounds = array<i64: 1, 8>}]} {
    %c0 = arith.constant 0 : index
    %c0_0 = arith.constant 0 : index
    %0 = vector.load %arg1[%c0, %c0_0] : memref<1x256xbf16, #tpu.memory_space<vmem>>, vector<1x256xbf16>
    %c0_1 = arith.constant 0 : index
    %c0_2 = arith.constant 0 : index
    %1 = vector.load %arg2[%c0_1, %c0_2] : memref<257x128xbf16, #tpu.memory_space<vmem>>, vector<256x128xbf16>
    %c256 = arith.constant 256 : index
    %c0_3 = arith.constant 0 : index
    %2 = vector.load %arg2[%c256, %c0_3] : memref<257x128xbf16, #tpu.memory_space<vmem>>, vector<1x128xbf16>
    %3 = arith.extf %2 : vector<1x128xbf16> to vector<1x128xf32>
    %cst = arith.constant dense<0.000000e+00> : vector<1x128xf32>
    %4 = tpu.matmul %0, %1, %cst {dimension_numbers = #tpu.dot_dimension_numbers<[1], [0], [0], [1], [0, 0, 1, 1], [], []>} : vector<1x256xbf16>, vector<256x128xbf16>, vector<1x128xf32> -> vector<1x128xf32>
    %5 = arith.addf %4, %3 : vector<1x128xf32>
    %cst_4 = arith.constant 0.000000e+00 : f32
    %6 = vector.broadcast %cst_4 : f32 to vector<1x128xf32>
    %7 = arith.maximumf %5, %6 : vector<1x128xf32>
    %c0_5 = arith.constant 0 : index
    %c0_6 = arith.constant 0 : index
    %8 = vector.load %arg3[%c0_5, %c0_6] : memref<129x8xf32, #tpu.memory_space<vmem>>, vector<128x8xf32>
    %9 = arith.truncf %8 : vector<128x8xf32> to vector<128x8xbf16>
    %c128 = arith.constant 128 : index
    %c0_7 = arith.constant 0 : index
    %10 = vector.load %arg3[%c128, %c0_7] : memref<129x8xf32, #tpu.memory_space<vmem>>, vector<1x8xf32>
    %11 = arith.truncf %7 : vector<1x128xf32> to vector<1x128xbf16>
    %cst_8 = arith.constant dense<0.000000e+00> : vector<1x8xf32>
    %12 = tpu.matmul %11, %9, %cst_8 {dimension_numbers = #tpu.dot_dimension_numbers<[1], [0], [0], [1], [0, 0, 1, 1], [], []>} : vector<1x128xbf16>, vector<128x8xbf16>, vector<1x8xf32> -> vector<1x8xf32>
    %13 = arith.addf %12, %10 : vector<1x8xf32>
    %c0_9 = arith.constant 0 : index
    %c0_10 = arith.constant 0 : index
    %14 = vector.load %arg4[%c0_9, %c0_10] : memref<1x8xf32, #tpu.memory_space<vmem>>, vector<1x8xf32>
    tpu.vector_store %arg4[%c0_9, %c0_10], %13 {strides = array<i32>} : memref<1x8xf32, #tpu.memory_space<vmem>>, vector<1x8xf32>,
    return
  }
  func.func @transform_0(%arg0: i32) -> (i32, i32) {
    %c0_i32 = arith.constant 0 : i32
    %c0_i32_0 = arith.constant 0 : i32
    return %arg0, %c0_i32 : i32, i32
  }
  func.func @transform_1(%arg0: i32) -> (i32, i32) {
    %c0_i32 = arith.constant 0 : i32
    %c0_i32_0 = arith.constant 0 : i32
    %c0_i32_1 = arith.constant 0 : i32
    return %c0_i32, %c0_i32_0 : i32, i32
  }
  func.func @transform_2(%arg0: i32) -> (i32, i32) {
    %c0_i32 = arith.constant 0 : i32
    %c0_i32_0 = arith.constant 0 : i32
    %c0_i32_1 = arith.constant 0 : i32
    return %c0_i32, %c0_i32_0 : i32, i32
  }
  func.func @transform_3(%arg0: i32) -> (i32, i32) {
    %c0_i32 = arith.constant 0 : i32
    %c0_i32_0 = arith.constant 0 : i32
    return %arg0, %c0_i32 : i32, i32
  }
}

</mosaic_0001>

<bundles_post_ra>
// kernel: _regressor_fwd.1
= control target key start
LH: loop header
LB: loop body
LE: loop exit
PB: predicated region body
PF: predicated region fallthrough
CT: control target
= control target key end

     0   :  { %v407_v2 = vmov 0.0   ;;  %v63_v10 = vlaneseq  ;;  %v408_v14 = vmov 1966171168   ;;  %s557_s0 = inlined_call_operand.vmem [shape: bf16[1,256], index: 0, kind: input, shape index: {}]   ;;  %s558_s1 = inlined_call_operand.vmem [shape: bf16[257,128], index: 1, kind: input, shape index: {}]   ;;  %s559_s2 = inlined_call_operand.vmem [shape: f32[129,8], index: 2, kind: input, shape index: {}]   ;;  %s560_s3 = inlined_call_operand.hbm [shape: f32[1,8], index: 3, kind: output, shape index: {}]  }
   0x1   :  { %v367_v0 = vld [vmem:[%s558_s1 + $0x40] sm:$0xff]   ;;  %343 = vmatprep.subr.bf16.mxu1 %v407_v2  ;;  %v369_v3 = vld [vmem:[%s558_s1 + $0x48] sm:$0xff]   ;;  %v371_v5 = vld [vmem:[%s558_s1 + $0x50] sm:$0xff]   ;;  %v61_v15 = vunpack.c.l.s4 %v408_v14 }
   0x2   :  { %v368_v1 = vld [vmem:[%s558_s1] sm:$0xff]   ;;  %312 = vmatprep.subr.bf16.mxu0 %v367_v0  ;;  %v370_v4 = vld [vmem:[%s558_s1 + $0x8] sm:$0xff]   ;;  %v372_v6 = vld [vmem:[%s558_s1 + $0x10] sm:$0xff]   ;;  %v64_v16 = vshrl.u32 %v63_v10, 7 }
   0x3   :  { %313 = vmatpush3.bf16.msra.mxu0 %v368_v1  ;;  %v373_v7 = vld [vmem:[%s558_s1 + $0x58] sm:$0xff]   ;;  %v375_v9 = vld [vmem:[%s558_s1 + $0x60] sm:$0xff]   ;;  %v377_v12 = vld [vmem:[%s558_s1 + $0x68] sm:$0xff]   ;;  %v62_v24 = vunpack.c.0.s8 %v61_v15 }
   0x4   :  { %314 = vmatprep.subr.bf16.mxu0 %v369_v3  ;;  %v374_v8 = vld [vmem:[%s558_s1 + $0x18] sm:$0xff]   ;;  %v376_v11 = vld [vmem:[%s558_s1 + $0x20] sm:$0xff]   ;;  %v214_v18 = vld [vmem:[%s559_s2 + $0x8] sm:$0xff] }
   0x5   :  { %v295_v13 = vld.sshfl [vmem:[%s557_s0] sm:$0x11 pattern:$0x75316420]  ;;  %v215_v19 = vld [vmem:[%s559_s2 + $0x10] sm:$0xff]  ;;  %v216_v21 = vld [vmem:[%s559_s2 + $0x18] sm:$0xff]  ;;  %v65_v27 = vsub.s32 %v62_v24, %v64_v16 }
   0x6   :  { %v213_v17 = vld [vmem:[%s559_s2] sm:$0xff]  ;;  %v378_v22 = vld [vmem:[%s558_s1 + $0x28] sm:$0xff]   ;;  %v59_v23 = vcombine.high %v295_v13, %v295_v13  ;;  %v379_v25 = vld [vmem:[%s558_s1 + $0x70] sm:$0xff]   ;;  %v230_v26 = vpack.c.bf16 %v216_v21, %v215_v19 }
   0x7   :  { %315 = vmatpush3.bf16.msra.mxu0 %v370_v4  ;;  %v229_v20 = vpack.c.bf16 %v214_v18, %v213_v17  ;;  %v217_v28 = vld [vmem:[%s559_s2 + $0x20] sm:$0xff]  ;;  %v218_v29 = vld [vmem:[%s559_s2 + $0x28] sm:$0xff] }
   0x8   :  { %316 = vmatprep.subr.bf16.mxu0 %v371_v5 }
   0x9   :  { %344 = vmatpush3.bf16.msra.mxu1 %v229_v20 }
   0xa   :  { %345 = vmatprep.subr.bf16.mxu1 %v407_v2 }
   0xb   :  { %317 = vmatpush3.bf16.msra.mxu0 %v372_v6 }
   0xc   :  { %318 = vmatprep.subr.bf16.mxu0 %v373_v7 }
   0xf   :  { %319 = vmatpush3.bf16.msra.mxu0 %v374_v8 }
  0x10   :  { %320 = vmatprep.subr.bf16.mxu0 %v375_v9 }
  0x13   :  { %321 = vmatpush3.bf16.msra.mxu0 %v376_v11 }
  0x14   :  { %322 = vmatprep.subr.bf16.mxu0 %v377_v12 }
  0x15   :  { %8 = vsyncpa [#allocation3], 0  ;;  %v380_v30 = vld [vmem:[%s558_s1 + $0x30] sm:$0xff]   ;;  %v73_v31 = vrot.slane %v59_v23, %v65_v27  ;;  %v381_v32 = vld [vmem:[%s558_s1 + $0x78] sm:$0xff]   ;;  %346 = vmatpush3.bf16.msra.mxu1 %v230_v26  ;;  %v231_v33 = vpack.c.bf16 %v218_v29, %v217_v28  ;;  %v66_v40 = vrot.slane %v295_v13, %v65_v27  ;;  %vm409_vm0 = vmmov 0   ;;  %s410_s26 = smov [#allocation2]  }
  0x16   :  { %347 = vmatprep.subr.bf16.mxu1 %v407_v2  ;;  %v219_v34 = vld [vmem:[%s559_s2 + $0x30] sm:$0xff]  ;;  %v220_v35 = vld [vmem:[%s559_s2 + $0x38] sm:$0xff]  ;;  %v221_v38 = vld [vmem:[%s559_s2 + $0x40] sm:$0xff]  ;;  %359 = vmatprep.mubr.msk.bf16.mxu1 %vm409_vm0, %v407_v2  ;;  %s287_s27 = sshll.u32 %s410_s26, 4  ;;  %vm279_vm1 = vcmask 57344   ;;  %s288_s27 = int_to_ptr.vmem [resolvable:$true] %s287_s27 }
  0x17   :  { %323 = vmatpush3.bf16.msra.mxu0 %v378_v22  ;;  %204 = vmatprep.mubr.bf16.mxu0 %v73_v31  ;;  %v382_v36 = vld [vmem:[%s558_s1 + $0x38] sm:$0xff]   ;;  %v232_v37 = vpack.c.bf16 %v220_v35, %v219_v34  ;;  %v222_v39 = vld [vmem:[%s559_s2 + $0x48] sm:$0xff]  ;;  %v223_v42 = vld [vmem:[%s559_s2 + $0x50] sm:$0xff]  ;;  %s387_s28 = scalar_lea.vmem %s288_s27, 32  ;;  %p388_p1 = scmp.lt.s32.totalorder %s288_s27, %s288_s27 }
  0x18   :  { %324 = vmatprep.subr.bf16.mxu0 %v379_v25  ;;  %v233_v41 = vpack.c.bf16 %v222_v39, %v221_v38  ;;  %v224_v43 = vld [vmem:[%s559_s2 + $0x58] sm:$0xff]  ;;  %v225_v45 = vld [vmem:[%s559_s2 + $0x60] sm:$0xff]  ;;  %v226_v46 = vld [vmem:[%s559_s2 + $0x68] sm:$0xff] }
  0x19   :  { %348 = vmatpush3.bf16.msra.mxu1 %v231_v33  ;;  %v234_v44 = vpack.c.bf16 %v224_v43, %v223_v42  ;;  %v235_v47 = vpack.c.bf16 %v226_v46, %v225_v45  ;;  %v227_v48 = vld [vmem:[%s559_s2 + $0x70] sm:$0xff]  ;;  %v228_v49 = vld [vmem:[%s559_s2 + $0x78] sm:$0xff]  ;;  %v49_v51 = vld [vmem:[%s558_s1 + $0x80] sm:$0x1]  ;;  %s383_s1 = scalar_lea.vmem %s288_s27, 16 }
  0x1a   :  { %349 = vmatprep.subr.bf16.mxu1 %v407_v2  ;;  %v236_v50 = vpack.c.bf16 %v228_v49, %v227_v48  ;;  %v50_v53 = vunpack.c.l.bf16 %v49_v51  ;;  %v237_v61 = vld [vmem:[%s559_s2 + $0x80] sm:$0x1]  ;;  %p384_p0 = scmp.ne.s32.totalorder %s288_s27, %s383_s1  ;;  %p389_p2 = scmp.lt.s32.totalorder %s387_s28, %s383_s1 }
  0x1b   :  { %325 = vmatpush3.bf16.msra.mxu0 %v380_v30 }
  0x1c   :  { %326 = vmatprep.subr.bf16.mxu0 %v381_v32  ;;  %p390_p3 = por %p389_p2, %p388_p1 }
  0x1d   :  { %350 = vmatpush3.bf16.msra.mxu1 %v232_v37 }
  0x1e   :  { %351 = vmatprep.subr.bf16.mxu1 %v407_v2  ;;  %p391_p4 = pnand %p390_p3, %p384_p0 }
  0x1f   :  { %327 = vmatpush3.bf16.msra.mxu0 %v382_v36 }
  0x21   :  { %352 = vmatpush3.bf16.msra.mxu1 %v233_v41 }
  0x22   :  { %205 = vmatmul.mubr.bf16.vlgmr.msra.gmra.mrb[0].mxu0 %v66_v40  ;;  %353 = vmatprep.subr.bf16.mxu1 %v407_v2 }
  0x25   :  { %354 = vmatpush3.bf16.msra.mxu1 %v234_v44 }
  0x26   :  { %355 = vmatprep.subr.bf16.mxu1 %v407_v2 }
  0x29   :  { %356 = vmatpush3.bf16.msra.mxu1 %v235_v47 }
  0x2a   :  { %357 = vmatprep.subr.bf16.mxu1 %v407_v2 }
  0x2d   :  { %358 = vmatpush3.bf16.msra.mxu1 %v236_v50 }
  0xf5   :  { %v328_v52 = vpop.f32.mrb[0].mxu0 }
  0xf6   :  { %v329_v54 = vpop.f32.mrb[1].mxu0 }
  0xf7   :  { %v330_v55 = vadd.f32 %v329_v54, %v328_v52  ;;  %v331_v56 = vpop.f32.mrb[2].mxu0 }
  0xf8   :  { %v332_v57 = vpop.f32.mrb[3].mxu0 }
  0xf9   :  { %v207_v58 = vadd.f32 %v330_v55, %v50_v53 }
  0xfb   :  { %v212_v59 = vmax.f32 %v207_v58, 0.0 }
  0xfd   :  { %v238_v60 = vpack.c.bf16 %v212_v59, %v212_v59 }
  0xff   :  { %360 = vmatmul.mubr.bf16.vlgmr.msra.gmra.mrb[0].mxu1 %v238_v60 }
 0x1d2   :  { %v273_v62 = vpop.f32.mrb[0].mxu1 }
 0x1d3   :  { %v274_v63 = vadd.f32 %v273_v62, %v237_v61  ;;  %v361_v0 = vpop.f32.mrb[1].mxu1 }
 0x1d4   :  { %v276_v1 = vpop.f32.mrb[2].mxu1 }
 0x1d5   :  { %v362_v2 = vpop.f32.mrb[3].mxu1  ;;  %280 = vst.msk [vmem:[#allocation2] sm:$0x1] %vm279_vm1, %v274_v63 }
 0x1d6   :  { %394 = shalt.err (!%p391_p4)
}
 0x1d7   :  { %s395_s30 = scalar_lea.hbm %s560_s3, 16 }
 0x1d8   :  { %p396_p5 = scmp.ne.s32.totalorder %s560_s3, %s395_s30  ;;  %p399_p6 = scmp.lt.u32.totalorder %s395_s30, %s560_s3 }
 0x1da   :  { %p401_p7 = pnand %p399_p6, %p396_p5 }
 0x1dc   :  { %404 = shalt.err (!%p401_p7)
}
 0x1dd   :  { %290 = dma.vmem_to_hbm [thread:$0]  %s288_s27, 16, %s560_s3, [#allocation3]  }
 0x1de   :  { %405 = dma.done.wait [#allocation3], 16  }
 0x1df   :  { %406 = vsyncadd [#allocation3], 4294967280 }
 0x1e0   :  { %294 = vsyncpa [#allocation3], 1 }

</bundles_post_ra>
